<compile_context>
chip_gen: v7x
topology: tpu7x:2x2x1
jax: 0.10.0
libtpu: 0.0.40
codegen_flags: <defaults>
</compile_context>

<pallas_src>
import functools

import numpy as np
import jax
import jax.numpy as jnp
from jax.experimental import pallas as pl
from jax.experimental.pallas import tpu as pltpu

LN_EPS = 1e-5


def _layernorm(v, g, b):
    mu = jnp.mean(v, axis=-1, keepdims=True)
    var = jnp.mean((v - mu) ** 2, axis=-1, keepdims=True)
    return (v - mu) * jax.lax.rsqrt(var + LN_EPS) * g + b


# ----------------------------------------------------------------------------
# Fused kernel: grid = (batch, num_encoder); one batch element / layer per step
# ----------------------------------------------------------------------------
def fused_transformer_kernel(
        x_ref, pe_ref,
        wqkv_ref, bqkv_ref, wo_ref, vec_ref, w1_ref, b1_ref, w2_ref,
        fc1w_ref, fc1b_ref, fc2w_ref, fc2b_ref,
        o_ref,
        h_ref,
        *, seq, dim_model, scale, num_encoder):
    L, D = seq, dim_model
    e = pl.program_id(1)

    # ---- e == 0: Positional_Encoding (dropout = identity) ----
    @pl.when(e == 0)
    def _():
        h_ref[...] = x_ref[0] + pe_ref[...]          # (L, D) + (L, D)

    h = h_ref[...]                                   # (L, D) f32, persistent

    # Packed per-layer D-wide vectors: rows = bo, ln1_g, ln1_b, b2, ln2_g, ln2_b
    vecs = vec_ref[0]                                # (6, D)
    bo, ln1_g, ln1_b = vecs[0:1, :], vecs[1:2, :], vecs[2:3, :]
    b2, ln2_g, ln2_b = vecs[3:4, :], vecs[4:5, :], vecs[5:6, :]

    # ---- Multi_Head_Attention (num_head == 1), fused QKV projection ----
    qkv = jnp.dot(h, wqkv_ref[0], preferred_element_type=jnp.float32) + bqkv_ref[0]
    q = qkv[:, 0:D]
    k = qkv[:, D:2 * D]
    v = qkv[:, 2 * D:3 * D]

    att = jnp.dot(q, k.T, preferred_element_type=jnp.float32) * scale
    att = att - jnp.max(att, axis=-1, keepdims=True)
    p = jnp.exp(att)
    p = p * pl.reciprocal(jnp.sum(p, axis=-1, keepdims=True), approx=True)
    ctx = jnp.dot(p, v, preferred_element_type=jnp.float32)

    attn = jnp.dot(ctx, wo_ref[0], preferred_element_type=jnp.float32) + bo
    y = _layernorm(attn + h, ln1_g, ln1_b)

    # ---- Position_wise_Feed_Forward ----
    f = jnp.maximum(
        jnp.dot(y, w1_ref[0], preferred_element_type=jnp.float32) + b1_ref[0], 0.0)
    z = jnp.dot(f, w2_ref[0], preferred_element_type=jnp.float32) + b2
    h_new = _layernorm(z + y, ln2_g, ln2_b)
    h_ref[...] = h_new

    # ---- e == last: classifier: out.view(B,-1) @ fc1 @ fc2 (dropouts = id) ----
    @pl.when(e == num_encoder - 1)
    def _():
        # Row-major flatten via a single lane-dim concatenate, then ONE
        # (1, L*D) @ (L*D, last_hidden) contraction (no per-row matmul chain).
        flat = jnp.concatenate([h_new[l:l + 1, :] for l in range(L)], axis=1)
        hid = (jnp.dot(flat, fc1w_ref[...], preferred_element_type=jnp.float32)
               + fc1b_ref[...])
        o_ref[0] = (jnp.dot(hid, fc2w_ref[...], preferred_element_type=jnp.float32)
                    + fc2b_ref[...])


# ----------------------------------------------------------------------------
# Wrapper
# ----------------------------------------------------------------------------
def classification_transformer_forward(x, params, num_encoder):
    """Full forward pass.  x: (B, pad_size, dim_model) f32 -> (B, num_classes)."""
    B, L, D = x.shape
    LH = params["fc1_b"].shape[-1]
    C = params["fc2_b"].shape[-1]
    H = params["b1"].shape[-1]

    # Host/XLA-side weight packing (fused QKV, packed per-layer vectors).
    wqkv = jnp.concatenate([params["wq"], params["wk"], params["wv"]], axis=-1)
    bqkv = jnp.concatenate([params["bq"], params["bk"], params["bv"]], axis=-1)
    vec = jnp.concatenate([params["bo"], params["ln1_g"], params["ln1_b"],
                           params["b2"], params["ln2_g"], params["ln2_b"]], axis=1)

    kernel = functools.partial(
        fused_transformer_kernel,
        seq=L, dim_model=D, scale=float(D) ** -0.5,   # K.size(-1) ** -0.5, num_head=1
        num_encoder=num_encoder)

    def layer(shape):   # per-layer weight block, indexed by the encoder axis
        return pl.BlockSpec((1,) + shape, lambda b, e: (e, 0, 0))

    def const2(shape):  # grid-invariant 2-D block (resident in VMEM)
        return pl.BlockSpec(shape, lambda b, e: (0, 0))

    out = pl.pallas_call(
        kernel,
        out_shape=jax.ShapeDtypeStruct((B, 1, C), jnp.float32),
        grid_spec=pltpu.PrefetchScalarGridSpec(
            num_scalar_prefetch=0,
            grid=(B, num_encoder),
            in_specs=[
                pl.BlockSpec((1, L, D), lambda b, e: (b, 0, 0)),   # x
                const2((L, D)),                                    # pe
                layer((D, 3 * D)),                                 # wqkv
                layer((1, 3 * D)),                                 # bqkv
                layer((D, D)),                                     # wo
                layer((6, D)),                                     # packed vectors
                layer((D, H)),                                     # w1
                layer((1, H)),                                     # b1
                layer((H, D)),                                     # w2
                const2((L * D, LH)),                               # fc1_w
                const2((1, LH)),                                   # fc1_b
                const2((LH, C)),                                   # fc2_w
                const2((1, C)),                                    # fc2_b
            ],
            out_specs=pl.BlockSpec((1, 1, C), lambda b, e: (b, 0, 0)),
            scratch_shapes=[pltpu.VMEM((L, D), jnp.float32)],      # persistent h
        ),
        compiler_params=pltpu.CompilerParams(
            # batch axis splits across v7x's two TensorCores; encoder axis is a
            # sequential reduction-style carry over the VMEM-resident h.
            dimension_semantics=("parallel", "arbitrary")),
    )(x, params["pe"], wqkv, bqkv, params["wo"], vec,
      params["w1"], params["b1"], params["w2"],
      params["fc1_w"], params["fc1_b"], params["fc2_w"], params["fc2_b"])
    return out.reshape(B, C)


# ----------------------------------------------------------------------------
# Deterministic parameter construction (PyTorch-default-like uniform init)
# ----------------------------------------------------------------------------
def make_linear(key, fan_in, fan_out):
    kw, kb = jax.random.split(key)
    bound = 1.0 / np.sqrt(fan_in)
    # stored as (in, out) so kernels compute y = x @ W + b
    w = jax.random.uniform(kw, (fan_in, fan_out), jnp.float32, -bound, bound)
    b = jax.random.uniform(kb, (1, fan_out), jnp.float32, -bound, bound)
    return w, b


def make_positional_encoding(pad_size, embed):
    i = np.arange(embed)
    pos = np.arange(pad_size)
    pe = pos[:, None] / (10000.0 ** ((i // 2 * 2.0) / embed))[None, :]
    pe[:, 0::2] = np.sin(pe[:, 0::2])
    pe[:, 1::2] = np.cos(pe[:, 1::2])
    return jnp.asarray(pe, dtype=jnp.float32)


def make_params(key, *, dim_model, hidden, pad_size, last_hidden, num_classes,
                num_encoder):
    k_enc, k_fc1, k_fc2 = jax.random.split(key, 3)

    def make_encoder(k):
        kq, kk, kv, ko, k1, k2 = jax.random.split(k, 6)
        wq, bq = make_linear(kq, dim_model, dim_model)
        wk, bk = make_linear(kk, dim_model, dim_model)
        wv, bv = make_linear(kv, dim_model, dim_model)
        wo, bo = make_linear(ko, dim_model, dim_model)
        w1, b1 = make_linear(k1, dim_model, hidden)
        w2, b2 = make_linear(k2, hidden, dim_model)
        ones = jnp.ones((1, dim_model), jnp.float32)
        zeros = jnp.zeros((1, dim_model), jnp.float32)
        return dict(wq=wq, bq=bq, wk=wk, bk=bk, wv=wv, bv=bv, wo=wo, bo=bo,
                    ln1_g=ones, ln1_b=zeros,
                    w1=w1, b1=b1, w2=w2, b2=b2,
                    ln2_g=ones, ln2_b=zeros)

    # The PyTorch module deepcopies one Encoder num_encoder times; each copy
    # has its own parameters, so keep a stacked (num_encoder, ...) set.
    layers = [make_encoder(k) for k in jax.random.split(k_enc, num_encoder)]
    stacked = {name: jnp.stack([lyr[name] for lyr in layers])
               for name in layers[0]}

    fc1_w, fc1_b = make_linear(k_fc1, pad_size * dim_model, last_hidden)
    fc2_w, fc2_b = make_linear(k_fc2, last_hidden, num_classes)

    params = dict(pe=make_positional_encoding(pad_size, dim_model),
                  fc1_w=fc1_w, fc1_b=fc1_b, fc2_w=fc2_w, fc2_b=fc2_b)
    params.update(stacked)
    return params


# ----------------------------------------------------------------------------
# Pure-JAX reference (for correctness check)
# ----------------------------------------------------------------------------
def reference_forward(x, params, num_encoder):
    def layernorm(v, g, b):
        mu = jnp.mean(v, axis=-1, keepdims=True)
        var = jnp.mean((v - mu) ** 2, axis=-1, keepdims=True)
        return (v - mu) * jax.lax.rsqrt(var + LN_EPS) * g + b

    out = x + params["pe"][None]
    scale = x.shape[-1] ** -0.5
    for e in range(num_encoder):
        q = out @ params["wq"][e] + params["bq"][e]
        k = out @ params["wk"][e] + params["bk"][e]
        v = out @ params["wv"][e] + params["bv"][e]
        att = jax.nn.softmax(jnp.einsum("bld,bmd->blm", q, k) * scale, axis=-1)
        ctx = jnp.einsum("blm,bmd->bld", att, v)
        y = layernorm(ctx @ params["wo"][e] + params["bo"][e] + out,
                      params["ln1_g"][e], params["ln1_b"][e])
        f = jnp.maximum(y @ params["w1"][e] + params["b1"][e], 0.0)
        out = layernorm(f @ params["w2"][e] + params["b2"][e] + y,
                        params["ln2_g"][e], params["ln2_b"][e])
    flat = out.reshape(out.shape[0], -1)
    return (flat @ params["fc1_w"] + params["fc1_b"]) @ params["fc2_w"] + params["fc2_b"]


# ----------------------------------------------------------------------------
if __name__ == "__main__":
    # embedding_size == dim_model (required by the PyTorch module's math)
    B, PAD_SIZE, DIM_MODEL = 2, 8, 32
    HIDDEN, LAST_HIDDEN, NUM_CLASSES = 64, 32, 4
    NUM_ENCODER = 2      # exercises the encoder grid axis + persistent scratch
    # num_head = 1 (module default).
    # TODO(synk): num_head > 1 uses PyTorch's raw .view() head split (not the
    # standard per-head reshape); only num_head == 1 is implemented here.

    root = jax.random.PRNGKey(0)
    kx, kp = jax.random.split(root)
    x = jax.random.normal(kx, (B, PAD_SIZE, DIM_MODEL), dtype=jnp.float32)
    params = make_params(kp, dim_model=DIM_MODEL, hidden=HIDDEN,
                         pad_size=PAD_SIZE, last_hidden=LAST_HIDDEN,
                         num_classes=NUM_CLASSES, num_encoder=NUM_ENCODER)

    fwd = jax.jit(functools.partial(classification_transformer_forward,
                                    num_encoder=NUM_ENCODER))
    logits = jax.block_until_ready(fwd(x, params))

    ref = reference_forward(x, params, NUM_ENCODER)
    # Tolerance loosened slightly for the EUP approximate reciprocal in the
    # in-kernel softmax normalization (per perf review).
    np.testing.assert_allclose(np.asarray(logits), np.asarray(ref),
                               rtol=5e-3, atol=5e-3)
    print("KERNEL_OK")
</pallas_src>

<mosaic_0001>
module attributes {stable_mosaic.version = 11 : i64} {
  func.func @fused_transformer_kernel(%arg0: i32, %arg1: i32, %arg2: memref<1x8x32xf32, #tpu.memory_space<vmem>>, %arg3: memref<8x32xf32, #tpu.memory_space<vmem>>, %arg4: memref<1x32x96xf32, #tpu.memory_space<vmem>>, %arg5: memref<1x1x96xf32, #tpu.memory_space<vmem>>, %arg6: memref<1x32x32xf32, #tpu.memory_space<vmem>>, %arg7: memref<1x6x32xf32, #tpu.memory_space<vmem>>, %arg8: memref<1x32x64xf32, #tpu.memory_space<vmem>>, %arg9: memref<1x1x64xf32, #tpu.memory_space<vmem>>, %arg10: memref<1x64x32xf32, #tpu.memory_space<vmem>>, %arg11: memref<256x32xf32, #tpu.memory_space<vmem>>, %arg12: memref<1x32xf32, #tpu.memory_space<vmem>>, %arg13: memref<32x4xf32, #tpu.memory_space<vmem>>, %arg14: memref<1x4xf32, #tpu.memory_space<vmem>>, %arg15: memref<1x1x4xf32, #tpu.memory_space<vmem>>, %arg16: memref<8x32xf32, #tpu.memory_space<vmem>>) attributes {dimension_semantics = [#tpu.dimension_semantics<parallel>, #tpu.dimension_semantics<arbitrary>], iteration_bounds = array<i64: 2, 2>, scalar_prefetch = 0 : i64, scratch_operands = 1 : i64, tpu.core_type = #tpu.core_type<tc>, window_params = [{transform_indices = @transform_0, window_bounds = array<i64: 1, 8, 32>}, {pipeline_mode = #tpu.pipeline_mode<synchronous>, transform_indices = @transform_1, window_bounds = array<i64: 8, 32>}, {transform_indices = @transform_2, window_bounds = array<i64: 1, 32, 96>}, {transform_indices = @transform_3, window_bounds = array<i64: 1, 1, 96>}, {transform_indices = @transform_4, window_bounds = array<i64: 1, 32, 32>}, {transform_indices = @transform_5, window_bounds = array<i64: 1, 6, 32>}, {transform_indices = @transform_6, window_bounds = array<i64: 1, 32, 64>}, {transform_indices = @transform_7, window_bounds = array<i64: 1, 1, 64>}, {transform_indices = @transform_8, window_bounds = array<i64: 1, 64, 32>}, {pipeline_mode = #tpu.pipeline_mode<synchronous>, transform_indices = @transform_9, window_bounds = array<i64: 256, 32>}, {pipeline_mode = #tpu.pipeline_mode<synchronous>, transform_indices = @transform_10, window_bounds = array<i64: 1, 32>}, {pipeline_mode = #tpu.pipeline_mode<synchronous>, transform_indices = @transform_11, window_bounds = array<i64: 32, 4>}, {pipeline_mode = #tpu.pipeline_mode<synchronous>, transform_indices = @transform_12, window_bounds = array<i64: 1, 4>}, {transform_indices = @transform_13, window_bounds = array<i64: 1, 1, 4>}]} {
    %c0_i32 = arith.constant 0 : i32
    %0 = arith.cmpi eq, %arg1, %c0_i32 : i32
    %1 = arith.extui %0 : i1 to i32
    %c0_i32_0 = arith.constant 0 : i32
    %2 = arith.cmpi ne, %1, %c0_i32_0 : i32
    scf.if %2 {
      %c0_45 = arith.constant 0 : index
      %c0_46 = arith.constant 0 : index
      %c0_47 = arith.constant 0 : index
      %106 = vector.load %arg2[%c0_45, %c0_46, %c0_47] : memref<1x8x32xf32, #tpu.memory_space<vmem>>, vector<1x8x32xf32>
      %107 = vector.shape_cast %106 : vector<1x8x32xf32> to vector<8x32xf32>
      %c0_48 = arith.constant 0 : index
      %c0_49 = arith.constant 0 : index
      %108 = vector.load %arg3[%c0_48, %c0_49] : memref<8x32xf32, #tpu.memory_space<vmem>>, vector<8x32xf32>
      %109 = arith.addf %107, %108 : vector<8x32xf32>
      %c0_50 = arith.constant 0 : index
      %c0_51 = arith.constant 0 : index
      %110 = vector.load %arg16[%c0_50, %c0_51] : memref<8x32xf32, #tpu.memory_space<vmem>>, vector<8x32xf32>
      tpu.vector_store %arg16[%c0_50, %c0_51], %109 {strides = array<i32>} : memref<8x32xf32, #tpu.memory_space<vmem>>, vector<8x32xf32>,
    } else {
    }
    %c0 = arith.constant 0 : index
    %c0_1 = arith.constant 0 : index
    %3 = vector.load %arg16[%c0, %c0_1] : memref<8x32xf32, #tpu.memory_space<vmem>>, vector<8x32xf32>
    %c0_2 = arith.constant 0 : index
    %c0_3 = arith.constant 0 : index
    %c0_4 = arith.constant 0 : index
    %4 = vector.load %arg7[%c0_2, %c0_3, %c0_4] : memref<1x6x32xf32, #tpu.memory_space<vmem>>, vector<1x6x32xf32>
    %5 = vector.shape_cast %4 : vector<1x6x32xf32> to vector<6x32xf32>
    %6 = vector.extract_strided_slice %5 {offsets = [0, 0], sizes = [1, 32], strides = [1, 1]} : vector<6x32xf32> to vector<1x32xf32>
    %7 = vector.extract_strided_slice %5 {offsets = [1, 0], sizes = [1, 32], strides = [1, 1]} : vector<6x32xf32> to vector<1x32xf32>
    %8 = vector.extract_strided_slice %5 {offsets = [2, 0], sizes = [1, 32], strides = [1, 1]} : vector<6x32xf32> to vector<1x32xf32>
    %9 = vector.extract_strided_slice %5 {offsets = [3, 0], sizes = [1, 32], strides = [1, 1]} : vector<6x32xf32> to vector<1x32xf32>
    %10 = vector.extract_strided_slice %5 {offsets = [4, 0], sizes = [1, 32], strides = [1, 1]} : vector<6x32xf32> to vector<1x32xf32>
    %11 = vector.extract_strided_slice %5 {offsets = [5, 0], sizes = [1, 32], strides = [1, 1]} : vector<6x32xf32> to vector<1x32xf32>
    %c0_5 = arith.constant 0 : index
    %c0_6 = arith.constant 0 : index
    %c0_7 = arith.constant 0 : index
    %12 = vector.load %arg4[%c0_5, %c0_6, %c0_7] : memref<1x32x96xf32, #tpu.memory_space<vmem>>, vector<1x32x96xf32>
    %13 = vector.shape_cast %12 : vector<1x32x96xf32> to vector<32x96xf32>
    %cst = arith.constant dense<0.000000e+00> : vector<8x96xf32>
    %14 = tpu.matmul %3, %13, %cst {dimension_numbers = #tpu.dot_dimension_numbers<[1], [0], [0], [1], [0, 0, 1, 1], [], []>} : vector<8x32xf32>, vector<32x96xf32>, vector<8x96xf32> -> vector<8x96xf32>
    %c0_8 = arith.constant 0 : index
    %c0_9 = arith.constant 0 : index
    %c0_10 = arith.constant 0 : index
    %15 = vector.load %arg5[%c0_8, %c0_9, %c0_10] : memref<1x1x96xf32, #tpu.memory_space<vmem>>, vector<1x1x96xf32>
    %16 = vector.shape_cast %15 : vector<1x1x96xf32> to vector<1x96xf32>
    %17 = vector.broadcast %16 : vector<1x96xf32> to vector<8x96xf32>
    %18 = arith.addf %14, %17 : vector<8x96xf32>
    %19 = vector.extract_strided_slice %18 {offsets = [0, 0], sizes = [8, 32], strides = [1, 1]} : vector<8x96xf32> to vector<8x32xf32>
    %20 = vector.extract_strided_slice %18 {offsets = [0, 32], sizes = [8, 32], strides = [1, 1]} : vector<8x96xf32> to vector<8x32xf32>
    %21 = vector.extract_strided_slice %18 {offsets = [0, 64], sizes = [8, 32], strides = [1, 1]} : vector<8x96xf32> to vector<8x32xf32>
    %22 = tpu.transpose %20, [1, 0] : vector<8x32xf32> -> vector<32x8xf32>
    %cst_11 = arith.constant dense<0.000000e+00> : vector<8x8xf32>
    %23 = tpu.matmul %19, %22, %cst_11 {dimension_numbers = #tpu.dot_dimension_numbers<[1], [0], [0], [1], [0, 0, 1, 1], [], []>} : vector<8x32xf32>, vector<32x8xf32>, vector<8x8xf32> -> vector<8x8xf32>
    %cst_12 = arith.constant 0.176776692 : f32
    %24 = vector.broadcast %cst_12 : f32 to vector<8x8xf32>
    %25 = arith.mulf %23, %24 : vector<8x8xf32>
    %cst_13 = arith.constant dense<0xFF800000> : vector<8xf32>
    %26 = vector.multi_reduction <maximumf>, %25, %cst_13 [1] : vector<8x8xf32> to vector<8xf32>
    %27 = vector.shape_cast %26 : vector<8xf32> to vector<8x1xf32>
    %28 = vector.broadcast %27 : vector<8x1xf32> to vector<8x8xf32>
    %29 = arith.subf %25, %28 : vector<8x8xf32>
    %30 = math.exp %29 : vector<8x8xf32>
    %cst_14 = arith.constant dense<0.000000e+00> : vector<8xf32>
    %31 = vector.multi_reduction <add>, %30, %cst_14 [1] : vector<8x8xf32> to vector<8xf32>
    %32 = vector.shape_cast %31 : vector<8xf32> to vector<8x1xf32>
    %33 = tpu.reciprocal %32 {approx = true} : vector<8x1xf32> -> vector<8x1xf32>
    %34 = vector.broadcast %33 : vector<8x1xf32> to vector<8x8xf32>
    %35 = arith.mulf %30, %34 : vector<8x8xf32>
    %cst_15 = arith.constant dense<0.000000e+00> : vector<8x32xf32>
    %36 = tpu.matmul %35, %21, %cst_15 {dimension_numbers = #tpu.dot_dimension_numbers<[1], [0], [0], [1], [0, 0, 1, 1], [], []>} : vector<8x8xf32>, vector<8x32xf32>, vector<8x32xf32> -> vector<8x32xf32>
    %c0_16 = arith.constant 0 : index
    %c0_17 = arith.constant 0 : index
    %c0_18 = arith.constant 0 : index
    %37 = vector.load %arg6[%c0_16, %c0_17, %c0_18] : memref<1x32x32xf32, #tpu.memory_space<vmem>>, vector<1x32x32xf32>
    %38 = vector.shape_cast %37 : vector<1x32x32xf32> to vector<32x32xf32>
    %cst_19 = arith.constant dense<0.000000e+00> : vector<8x32xf32>
    %39 = tpu.matmul %36, %38, %cst_19 {dimension_numbers = #tpu.dot_dimension_numbers<[1], [0], [0], [1], [0, 0, 1, 1], [], []>} : vector<8x32xf32>, vector<32x32xf32>, vector<8x32xf32> -> vector<8x32xf32>
    %40 = vector.broadcast %6 : vector<1x32xf32> to vector<8x32xf32>
    %41 = arith.addf %39, %40 : vector<8x32xf32>
    %42 = arith.addf %41, %3 : vector<8x32xf32>
    %cst_20 = arith.constant dense<0.000000e+00> : vector<8xf32>
    %43 = vector.multi_reduction <add>, %42, %cst_20 [1] : vector<8x32xf32> to vector<8xf32>
    %44 = vector.shape_cast %43 : vector<8xf32> to vector<8x1xf32>
    %cst_21 = arith.constant 3.200000e+01 : f32
    %45 = vector.broadcast %cst_21 : f32 to vector<8x1xf32>
    %46 = arith.divf %44, %45 : vector<8x1xf32>
    %47 = vector.broadcast %46 : vector<8x1xf32> to vector<8x32xf32>
    %48 = arith.subf %42, %47 : vector<8x32xf32>
    %49 = arith.mulf %48, %48 : vector<8x32xf32>
    %cst_22 = arith.constant dense<0.000000e+00> : vector<8xf32>
    %50 = vector.multi_reduction <add>, %49, %cst_22 [1] : vector<8x32xf32> to vector<8xf32>
    %51 = vector.shape_cast %50 : vector<8xf32> to vector<8x1xf32>
    %cst_23 = arith.constant 3.200000e+01 : f32
    %52 = vector.broadcast %cst_23 : f32 to vector<8x1xf32>
    %53 = arith.divf %51, %52 : vector<8x1xf32>
    %54 = vector.broadcast %46 : vector<8x1xf32> to vector<8x32xf32>
    %55 = arith.subf %42, %54 : vector<8x32xf32>
    %cst_24 = arith.constant 9.99999974E-6 : f32
    %56 = vector.broadcast %cst_24 : f32 to vector<8x1xf32>
    %57 = arith.addf %53, %56 : vector<8x1xf32>
    %58 = math.rsqrt %57 : vector<8x1xf32>
    %59 = vector.broadcast %58 : vector<8x1xf32> to vector<8x32xf32>
    %60 = arith.mulf %55, %59 : vector<8x32xf32>
    %61 = vector.broadcast %7 : vector<1x32xf32> to vector<8x32xf32>
    %62 = arith.mulf %60, %61 : vector<8x32xf32>
    %63 = vector.broadcast %8 : vector<1x32xf32> to vector<8x32xf32>
    %64 = arith.addf %62, %63 : vector<8x32xf32>
    %c0_25 = arith.constant 0 : index
    %c0_26 = arith.constant 0 : index
    %c0_27 = arith.constant 0 : index
    %65 = vector.load %arg8[%c0_25, %c0_26, %c0_27] : memref<1x32x64xf32, #tpu.memory_space<vmem>>, vector<1x32x64xf32>
    %66 = vector.shape_cast %65 : vector<1x32x64xf32> to vector<32x64xf32>
    %cst_28 = arith.constant dense<0.000000e+00> : vector<8x64xf32>
    %67 = tpu.matmul %64, %66, %cst_28 {dimension_numbers = #tpu.dot_dimension_numbers<[1], [0], [0], [1], [0, 0, 1, 1], [], []>} : vector<8x32xf32>, vector<32x64xf32>, vector<8x64xf32> -> vector<8x64xf32>
    %c0_29 = arith.constant 0 : index
    %c0_30 = arith.constant 0 : index
    %c0_31 = arith.constant 0 : index
    %68 = vector.load %arg9[%c0_29, %c0_30, %c0_31] : memref<1x1x64xf32, #tpu.memory_space<vmem>>, vector<1x1x64xf32>
    %69 = vector.shape_cast %68 : vector<1x1x64xf32> to vector<1x64xf32>
    %70 = vector.broadcast %69 : vector<1x64xf32> to vector<8x64xf32>
    %71 = arith.addf %67, %70 : vector<8x64xf32>
    %cst_32 = arith.constant 0.000000e+00 : f32
    %72 = vector.broadcast %cst_32 : f32 to vector<8x64xf32>
    %73 = arith.maximumf %71, %72 : vector<8x64xf32>
    %c0_33 = arith.constant 0 : index
    %c0_34 = arith.constant 0 : index
    %c0_35 = arith.constant 0 : index
    %74 = vector.load %arg10[%c0_33, %c0_34, %c0_35] : memref<1x64x32xf32, #tpu.memory_space<vmem>>, vector<1x64x32xf32>
    %75 = vector.shape_cast %74 : vector<1x64x32xf32> to vector<64x32xf32>
    %cst_36 = arith.constant dense<0.000000e+00> : vector<8x32xf32>
    %76 = tpu.matmul %73, %75, %cst_36 {dimension_numbers = #tpu.dot_dimension_numbers<[1], [0], [0], [1], [0, 0, 1, 1], [], []>} : vector<8x64xf32>, vector<64x32xf32>, vector<8x32xf32> -> vector<8x32xf32>
    %77 = vector.broadcast %9 : vector<1x32xf32> to vector<8x32xf32>
    %78 = arith.addf %76, %77 : vector<8x32xf32>
    %79 = arith.addf %78, %64 : vector<8x32xf32>
    %cst_37 = arith.constant dense<0.000000e+00> : vector<8xf32>
    %80 = vector.multi_reduction <add>, %79, %cst_37 [1] : vector<8x32xf32> to vector<8xf32>
    %81 = vector.shape_cast %80 : vector<8xf32> to vector<8x1xf32>
    %cst_38 = arith.constant 3.200000e+01 : f32
    %82 = vector.broadcast %cst_38 : f32 to vector<8x1xf32>
    %83 = arith.divf %81, %82 : vector<8x1xf32>
    %84 = vector.broadcast %83 : vector<8x1xf32> to vector<8x32xf32>
    %85 = arith.subf %79, %84 : vector<8x32xf32>
    %86 = arith.mulf %85, %85 : vector<8x32xf32>
    %cst_39 = arith.constant dense<0.000000e+00> : vector<8xf32>
    %87 = vector.multi_reduction <add>, %86, %cst_39 [1] : vector<8x32xf32> to vector<8xf32>
    %88 = vector.shape_cast %87 : vector<8xf32> to vector<8x1xf32>
    %cst_40 = arith.constant 3.200000e+01 : f32
    %89 = vector.broadcast %cst_40 : f32 to vector<8x1xf32>
    %90 = arith.divf %88, %89 : vector<8x1xf32>
    %91 = vector.broadcast %83 : vector<8x1xf32> to vector<8x32xf32>
    %92 = arith.subf %79, %91 : vector<8x32xf32>
    %cst_41 = arith.constant 9.99999974E-6 : f32
    %93 = vector.broadcast %cst_41 : f32 to vector<8x1xf32>
    %94 = arith.addf %90, %93 : vector<8x1xf32>
    %95 = math.rsqrt %94 : vector<8x1xf32>
    %96 = vector.broadcast %95 : vector<8x1xf32> to vector<8x32xf32>
    %97 = arith.mulf %92, %96 : vector<8x32xf32>
    %98 = vector.broadcast %10 : vector<1x32xf32> to vector<8x32xf32>
    %99 = arith.mulf %97, %98 : vector<8x32xf32>
    %100 = vector.broadcast %11 : vector<1x32xf32> to vector<8x32xf32>
    %101 = arith.addf %99, %100 : vector<8x32xf32>
    %c0_42 = arith.constant 0 : index
    %c0_43 = arith.constant 0 : index
    %102 = vector.load %arg16[%c0_42, %c0_43] : memref<8x32xf32, #tpu.memory_space<vmem>>, vector<8x32xf32>
    tpu.vector_store %arg16[%c0_42, %c0_43], %101 {strides = array<i32>} : memref<8x32xf32, #tpu.memory_space<vmem>>, vector<8x32xf32>,
    %c1_i32 = arith.constant 1 : i32
    %103 = arith.cmpi eq, %arg1, %c1_i32 : i32
    %104 = arith.extui %103 : i1 to i32
    %c0_i32_44 = arith.constant 0 : i32
    %105 = arith.cmpi ne, %104, %c0_i32_44 : i32
    scf.if %105 {
      %106 = vector.extract_strided_slice %101 {offsets = [0, 0], sizes = [1, 32], strides = [1, 1]} : vector<8x32xf32> to vector<1x32xf32>
      %107 = vector.extract_strided_slice %101 {offsets = [1, 0], sizes = [1, 32], strides = [1, 1]} : vector<8x32xf32> to vector<1x32xf32>
      %108 = vector.extract_strided_slice %101 {offsets = [2, 0], sizes = [1, 32], strides = [1, 1]} : vector<8x32xf32> to vector<1x32xf32>
      %109 = vector.extract_strided_slice %101 {offsets = [3, 0], sizes = [1, 32], strides = [1, 1]} : vector<8x32xf32> to vector<1x32xf32>
      %110 = vector.extract_strided_slice %101 {offsets = [4, 0], sizes = [1, 32], strides = [1, 1]} : vector<8x32xf32> to vector<1x32xf32>
      %111 = vector.extract_strided_slice %101 {offsets = [5, 0], sizes = [1, 32], strides = [1, 1]} : vector<8x32xf32> to vector<1x32xf32>
      %112 = vector.extract_strided_slice %101 {offsets = [6, 0], sizes = [1, 32], strides = [1, 1]} : vector<8x32xf32> to vector<1x32xf32>
      %113 = vector.extract_strided_slice %101 {offsets = [7, 0], sizes = [1, 32], strides = [1, 1]} : vector<8x32xf32> to vector<1x32xf32>
      %114 = tpu.concatenate %106, %107, %108, %109, %110, %111, %112, %113 in 1 : vector<1x32xf32>, vector<1x32xf32>, vector<1x32xf32>, vector<1x32xf32>, vector<1x32xf32>, vector<1x32xf32>, vector<1x32xf32>, vector<1x32xf32> -> vector<1x256xf32>
      %c0_45 = arith.constant 0 : index
      %c0_46 = arith.constant 0 : index
      %115 = vector.load %arg11[%c0_45, %c0_46] : memref<256x32xf32, #tpu.memory_space<vmem>>, vector<256x32xf32>
      %cst_47 = arith.constant dense<0.000000e+00> : vector<1x32xf32>
      %116 = tpu.matmul %114, %115, %cst_47 {dimension_numbers = #tpu.dot_dimension_numbers<[1], [0], [0], [1], [0, 0, 1, 1], [], []>} : vector<1x256xf32>, vector<256x32xf32>, vector<1x32xf32> -> vector<1x32xf32>
      %c0_48 = arith.constant 0 : index
      %c0_49 = arith.constant 0 : index
      %117 = vector.load %arg12[%c0_48, %c0_49] : memref<1x32xf32, #tpu.memory_space<vmem>>, vector<1x32xf32>
      %118 = arith.addf %116, %117 : vector<1x32xf32>
      %c0_50 = arith.constant 0 : index
      %c0_51 = arith.constant 0 : index
      %119 = vector.load %arg13[%c0_50, %c0_51] : memref<32x4xf32, #tpu.memory_space<vmem>>, vector<32x4xf32>
      %cst_52 = arith.constant dense<0.000000e+00> : vector<1x4xf32>
      %120 = tpu.matmul %118, %119, %cst_52 {dimension_numbers = #tpu.dot_dimension_numbers<[1], [0], [0], [1], [0, 0, 1, 1], [], []>} : vector<1x32xf32>, vector<32x4xf32>, vector<1x4xf32> -> vector<1x4xf32>
      %c0_53 = arith.constant 0 : index
      %c0_54 = arith.constant 0 : index
      %121 = vector.load %arg14[%c0_53, %c0_54] : memref<1x4xf32, #tpu.memory_space<vmem>>, vector<1x4xf32>
      %122 = arith.addf %120, %121 : vector<1x4xf32>
      %c0_55 = arith.constant 0 : index
      %c0_56 = arith.constant 0 : index
      %c0_57 = arith.constant 0 : index
      %123 = vector.load %arg15[%c0_55, %c0_56, %c0_57] : memref<1x1x4xf32, #tpu.memory_space<vmem>>, vector<1x1x4xf32>
      %124 = vector.shape_cast %123 : vector<1x1x4xf32> to vector<1x4xf32>
      %125 = vector.shape_cast %122 : vector<1x4xf32> to vector<1x1x4xf32>
      tpu.vector_store %arg15[%c0_55, %c0_56, %c0_57], %125 {strides = array<i32>} : memref<1x1x4xf32, #tpu.memory_space<vmem>>, vector<1x1x4xf32>,
    } else {
    }
    return
  }
  func.func @transform_0(%arg0: i32, %arg1: i32) -> (i32, i32, i32) {
    %c0_i32 = arith.constant 0 : i32
    %c0_i32_0 = arith.constant 0 : i32
    %c0_i32_1 = arith.constant 0 : i32
    return %arg0, %c0_i32, %c0_i32_0 : i32, i32, i32
  }
  func.func @transform_1(%arg0: i32, %arg1: i32) -> (i32, i32) {
    %c0_i32 = arith.constant 0 : i32
    %c0_i32_0 = arith.constant 0 : i32
    %c0_i32_1 = arith.constant 0 : i32
    return %c0_i32, %c0_i32_0 : i32, i32
  }
  func.func @transform_2(%arg0: i32, %arg1: i32) -> (i32, i32, i32) {
    %c0_i32 = arith.constant 0 : i32
    %c0_i32_0 = arith.constant 0 : i32
    %c0_i32_1 = arith.constant 0 : i32
    return %arg1, %c0_i32, %c0_i32_0 : i32, i32, i32
  }
  func.func @transform_3(%arg0: i32, %arg1: i32) -> (i32, i32, i32) {
    %c0_i32 = arith.constant 0 : i32
    %c0_i32_0 = arith.constant 0 : i32
    %c0_i32_1 = arith.constant 0 : i32
    return %arg1, %c0_i32, %c0_i32_0 : i32, i32, i32
  }
  func.func @transform_4(%arg0: i32, %arg1: i32) -> (i32, i32, i32) {
    %c0_i32 = arith.constant 0 : i32
    %c0_i32_0 = arith.constant 0 : i32
    %c0_i32_1 = arith.constant 0 : i32
    return %arg1, %c0_i32, %c0_i32_0 : i32, i32, i32
  }
  func.func @transform_5(%arg0: i32, %arg1: i32) -> (i32, i32, i32) {
    %c0_i32 = arith.constant 0 : i32
    %c0_i32_0 = arith.constant 0 : i32
    %c0_i32_1 = arith.constant 0 : i32
    return %arg1, %c0_i32, %c0_i32_0 : i32, i32, i32
  }
  func.func @transform_6(%arg0: i32, %arg1: i32) -> (i32, i32, i32) {
    %c0_i32 = arith.constant 0 : i32
    %c0_i32_0 = arith.constant 0 : i32
    %c0_i32_1 = arith.constant 0 : i32
    return %arg1, %c0_i32, %c0_i32_0 : i32, i32, i32
  }
  func.func @transform_7(%arg0: i32, %arg1: i32) -> (i32, i32, i32) {
    %c0_i32 = arith.constant 0 : i32
    %c0_i32_0 = arith.constant 0 : i32
    %c0_i32_1 = arith.constant 0 : i32
    return %arg1, %c0_i32, %c0_i32_0 : i32, i32, i32
  }
  func.func @transform_8(%arg0: i32, %arg1: i32) -> (i32, i32, i32) {
    %c0_i32 = arith.constant 0 : i32
    %c0_i32_0 = arith.constant 0 : i32
    %c0_i32_1 = arith.constant 0 : i32
    return %arg1, %c0_i32, %c0_i32_0 : i32, i32, i32
  }
  func.func @transform_9(%arg0: i32, %arg1: i32) -> (i32, i32) {
    %c0_i32 = arith.constant 0 : i32
    %c0_i32_0 = arith.constant 0 : i32
    %c0_i32_1 = arith.constant 0 : i32
    return %c0_i32, %c0_i32_0 : i32, i32
  }
  func.func @transform_10(%arg0: i32, %arg1: i32) -> (i32, i32) {
    %c0_i32 = arith.constant 0 : i32
    %c0_i32_0 = arith.constant 0 : i32
    %c0_i32_1 = arith.constant 0 : i32
    return %c0_i32, %c0_i32_0 : i32, i32
  }
  func.func @transform_11(%arg0: i32, %arg1: i32) -> (i32, i32) {
    %c0_i32 = arith.constant 0 : i32
    %c0_i32_0 = arith.constant 0 : i32
    %c0_i32_1 = arith.constant 0 : i32
    return %c0_i32, %c0_i32_0 : i32, i32
  }
  func.func @transform_12(%arg0: i32, %arg1: i32) -> (i32, i32) {
    %c0_i32 = arith.constant 0 : i32
    %c0_i32_0 = arith.constant 0 : i32
    %c0_i32_1 = arith.constant 0 : i32
    return %c0_i32, %c0_i32_0 : i32, i32
  }
  func.func @transform_13(%arg0: i32, %arg1: i32) -> (i32, i32, i32) {
    %c0_i32 = arith.constant 0 : i32
    %c0_i32_0 = arith.constant 0 : i32
    %c0_i32_1 = arith.constant 0 : i32
    return %arg0, %c0_i32, %c0_i32_0 : i32, i32, i32
  }
}

</mosaic_0001>

<bundles_post_ra>
// kernel: classification_transformer_forward.1
= control target key start
LH: loop header
LB: loop body
LE: loop exit
PB: predicated region body
PF: predicated region fallthrough
CT: control target
= control target key end

     0   :  { %s2420_s0 = inlined_call_operand.vmem [shape: f32[2,8,32], index: 0, kind: input, shape index: {}]   ;;  %s2421_s1 = inlined_call_operand.vmem [shape: f32[8,32], index: 1, kind: input, shape index: {}]   ;;  %s2422_s2 = inlined_call_operand.vmem [shape: f32[2,32,96], index: 2, kind: input, shape index: {}]   ;;  %s2423_s3 = inlined_call_operand.vmem [shape: f32[2,1,96], index: 3, kind: input, shape index: {}]   ;;  %s2424_s4 = inlined_call_operand.vmem [shape: f32[2,32,32], index: 4, kind: input, shape index: {}]   ;;  %s2425_s5 = inlined_call_operand.vmem [shape: f32[2,6,32], index: 5, kind: input, shape index: {}]   ;;  %s2426_s6 = inlined_call_operand.vmem [shape: f32[2,32,64], index: 6, kind: input, shape index: {}]   ;;  %s2427_s7 = inlined_call_operand.vmem [shape: f32[2,1,64], index: 7, kind: input, shape index: {}]   ;;  %s2428_s8 = inlined_call_operand.vmem [shape: f32[2,64,32], index: 8, kind: input, shape index: {}]   ;;  %s2429_s9 = inlined_call_operand.vmem [shape: f32[256,32], index: 9, kind: input, shape index: {}]   ;;  %s2430_s10 = inlined_call_operand.vmem [shape: f32[1,32], index: 10, kind: input, shape index: {}]   ;;  %s2431_s11 = inlined_call_operand.vmem [shape: f32[32,4], index: 11, kind: input, shape index: {}]   ;;  %s2432_s12 = inlined_call_operand.vmem [shape: f32[1,4], index: 12, kind: input, shape index: {}]   ;;  %s2433_s13 = inlined_call_operand.hbm [shape: f32[2,1,4], index: 13, kind: output, shape index: {}]  }
   0x1   :  { %2446 = sst [smem:[#allocation17_spill]] %s2420_s0 }
   0x2   :  { %2447 = sst [smem:[#allocation18_spill]] %s2422_s2 }
   0x3   :  { %2448 = sst [smem:[#allocation19_spill]] %s2424_s4 }
   0x4   :  { %2449 = sst [smem:[#allocation20_spill]] %s2430_s10 }
   0x5   :  { %2450 = sst [smem:[#allocation21_spill]] %s2432_s12 }
   0x6   :  { %2451 = sst [smem:[#allocation22_spill]] %s2433_s13 }
   0x7   :  { %18 = vsyncpa [#allocation4], 0 }
   0x8   :  { %20 = vsyncpa [#allocation4 + $0x1], 0  ;;  %s2040_s25 = smov 0   ;;  %s2042_s26 = smov 0  }
   0x9   :  { %s2044_s27 = smov 0   ;;  %s2046_s28 = smov 0  }
   0xa   :  { %s2048_s29 = smov 0   ;;  %s2050_s30 = smov 0  }
   0xb   :  { %s2052_s14 = smov 0   ;;  %s2054_s15 = smov 0  }
   0xc LB: > { %2452 = sst [smem:[#allocation6_spill]] %s1928_s25  ;;  %s1514_s16 = sadd.s32 4294967295, %s1956_s15   ;;  %s1956_s15 = sphi %s2054_s15, %s26_s15   ;;  %s1952_s14 = sphi %s2052_s14, %s2484_s14   ;;  %s1948_s30 = sphi %s2050_s30, %s2483_s30   ;;  %s1944_s29 = sphi %s2048_s29, %s2482_s29   ;;  %s1940_s28 = sphi %s2046_s28, %s2481_s28   ;;  %s1936_s27 = sphi %s2044_s27, %s2480_s27   ;;  %s1932_s26 = sphi %s2042_s26, %s2486_s26   ;;  %s1928_s25 = sphi %s2040_s25, %s2485_s25  }
   0xd   : > { %2453 = sst [smem:[#allocation7_spill]] %s1936_s27  ;;  %s1515_s17 = sadd.s32 4294967294, %s1956_s15  }
   0xe   : > { %2454 = sst [smem:[#allocation8_spill]] %s1944_s29  ;;  %s35_s18 = sadd.s32 1, %s1948_s30 }
   0xf   : > { %2455 = sst [smem:[#allocation9_spill]] %s1948_s30  ;;  %p36_p0 = scmp.ge.s32.totalorder %s35_s18, 2 }
  0x10   : > { %2456 = sst [smem:[#allocation10_spill]] %s1952_s14  ;;  %s38_s19 = sadd.s32 1, %s1952_s14 }
  0x11   : > { %2457 = sst [smem:[#allocation11_spill]] %s1956_s15  ;;  %p368_p1 = scmp.ne.s32.totalorder %s1936_s27, %s1932_s26 }
  0x12   : > { %p369_p2 = scmp.eq.s32.totalorder %s1514_s16, 3  ;;  %s2488_s18 = smov (%p36_p0, %s35_s18), 0 }
  0x13   : > { %2458 = sst [smem:[#allocation12_spill]] %s2488_s18  ;;  %s2490_s19 = smov (!%p36_p0, %s38_s19), %s1952_s14 }
  0x14   : > { %p2089_p3 = por %p369_p2, %p368_p1  ;;  %p374_p4 = scmp.ne.s32.totalorder %s1932_s26, %s1928_s25 }
  0x15   : > { %p40_p5 = scmp.ge.s32.totalorder %s2490_s19, 2  ;;  %p375_p6 = scmp.eq.s32.totalorder %s1515_s17, 3 }
  0x16   : > { %s2459_s20 = scalar_select %p2089_p3, 1, 0 }
  0x17   : > { %p1518_p7 = scmp.ge.s32.totalorder %s1956_s15, 1  ;;  %p466_p8 = scmp.lt.s32.totalorder %s1956_s15, 5 }
  0x18   : > { %2460 = sst [smem:[#allocation13_spill]] %s2459_s20  ;;  %s2492_s19 = smov (%p40_p5, %s2490_s19), 0 }
  0x19   : > { %2461 = sst [smem:[#allocation14_spill]] %s2492_s19  ;;  %p2099_p9 = por %p375_p6, %p374_p4 }
  0x1a   : > { %p467_p10 = pnand %p1518_p7, %p466_p8  ;;  %s355_s22 = ssub.s32 %s1952_s14, %s2492_s19 }
  0x1b   : > { %s2462_s21 = scalar_select %p2099_p9, 1, 0 }
  0x1c   : > { %s358_s23 = sadd.s32 1, %s1936_s27  ;;  %p356_p11 = scmp.eq.s32.totalorder %s355_s22, 0 }
  0x1d   : > { %2463 = sst [smem:[#allocation15_spill]] %s2462_s21  ;;  %470 = sbr.rel (%p467_p10) target bundleno = 2988 (0xbac), region = 72 }
  0x1e   : > { %s2107_s24 = scalar_select %p356_p11, %s1936_s27, %s358_s23  }
  0x1f   : > { %p538_p12 = scmp.lt.s32.totalorder (!%p467_p10), %s1944_s29, 1  ;;  %p542_p13 = scmp.lt.s32.totalorder (!%p467_p10), %s1940_s28, 1 }
  0x20   : > { %2464 = sst [smem:[#allocation16_spill]] %s2107_s24  ;;  %s2465_s0 = sld [smem:[#allocation17_spill]] (!%p467_p10) }
  0x21   : > { %s2466_s2 = sld [smem:[#allocation18_spill]] (!%p467_p10)  ;;  %s2467_s4 = sld [smem:[#allocation19_spill]] (!%p467_p10) }
  0x22   : > { %p1529_p0 = scmp.ne.s32.totalorder (!%p467_p10), %s1940_s28, 0 }
  0x24   : > { %s539_s17 = scalar_select %p538_p12, %s1944_s29, 1 }
  0x25   : > { %s2114_s18 = scalar_select %p542_p13, %s1940_s28, 1 }
  0x26   : > { %s1519_s22 = sshll.u32 %s539_s17, 3  ;;  %575 = sbr.rel (%p1529_p0) target bundleno = 45 (0x2d), region = 76  ;;  %v577_v1 = vld [vmem:[%s2421_s1] sm:$0xff] (!%p1529_p0)  ;;  %vm579_vm0 = vcmask (!%p1529_p0), 261120  }
  0x27   : > { %s541_s14 = scalar_lea.vmem %s2465_s0, %s1519_s22  ;;  %s1544_s30 = sshll.u32 %s2114_s18, 5 }
  0x28   : > { %s546_s16 = scalar_lea.vmem %s2466_s2, %s1544_s30  ;;  %s2130_s29 = scalar_lea.vmem %s2467_s4, %s1544_s30  ;;  %v576_v0 = vld [vmem:[%s541_s14] sm:$0xff] (!%p1529_p0) }
  0x29   : > { %s1524_s12 = sshll.u32 %s2114_s18, 3  ;;  %s2141_s27 = scalar_lea.vmem %s2426_s6, %s1544_s30  ;;  %v578_v2 = vadd.f32 (!%p1529_p0), %v577_v1, %v576_v0 }
  0x2a   : > { %s2136_s19 = scalar_lea.vmem %s2425_s5, %s1524_s12  ;;  %s566_s25 = scalar_lea.vmem %s2427_s7, %s2114_s18 }
  0x2b   : > { %s1547_s21 = sshll.u32 %s2114_s18, 6  ;;  %s2468_s2 = sand.u32 1, %s1932_s26   ;;  %580 = vst.msk [vmem:[#allocation2] sm:$0xff] (!%p1529_p0), %vm579_vm0, %v578_v2 }
  0x2c   : > { %s2151_s20 = scalar_lea.vmem %s2428_s8, %s1547_s21  ;;  %s2155_s4 = scalar_lea.vmem [#allocation3], %s2468_s2 }
  0x2d PF: > { %v583_v3 = vld [vmem:[%s546_s16] sm:$0xff]  ;;  %v584_v4 = vld [vmem:[%s546_s16 + $0x8] sm:$0xff]  ;;  %v585_v5 = vld [vmem:[%s546_s16 + $0x10] sm:$0xff]  ;;  %v1958_v6 = vmov 0.0|0.0   ;;  %vm1959_vm1 = vmmov 0   ;;  %v1960_v9 = vmov 0.0   ;;  %s2469_s30 = scalar_lea.vmem %s2423_s3, %s2114_s18  ;;  %v838_v38 = vlaneseq }
  0x2e   : > { %1689 = vmatprep.subr.bf16.mxu1 %v1958_v6  ;;  %v1690_v7 = vpack.c.bf16 %v584_v4, %v583_v3  ;;  %v586_v8 = vld [vmem:[%s546_s16 + $0x18] sm:$0xff]  ;;  %1624 = vmatprep.mubr.msk.f32.mxu1 %vm1959_vm1, %v1960_v9  ;;  %vm594_vm2 = vcmask 261120   ;;  %v1530_v12 = vld [vmem:[%s2469_s30] ss:$0 sm:$0xff]  ;;  %s1961_s14 = smov 96   ;;  %vm746_vm3 = vcmask 64512  }
  0x2f   : > { %1695 = vmatprep.subr.bf16.mxu0 %v1958_v6  ;;  %1645 = vmatprep.mubr.msk.f32.mxu0 %vm1959_vm1, %v1960_v9  ;;  %v1693_v10 = vpack.c.bf16 %v586_v8, %v585_v5  ;;  %s1962_s15 = smov 64   ;;  %v834_v26 = vld [vmem:[%s2130_s29] sm:$0xff]  ;;  %v835_v27 = vld [vmem:[%s2130_s29 + $0x8] sm:$0xff]  ;;  %v836_v28 = vld [vmem:[%s2130_s29 + $0x10] sm:$0xff]  ;;  %v2189_v39 = vshrl.u32 %v838_v38, 7  ;;  %vm1037_vm4 = vcmask 523264  }
  0x30   : > { %1691 = vmatpush3.bf16.msra.mxu1 %v1690_v7  ;;  %v1696_v29 = vpack.c.bf16 %v835_v27, %v834_v26  ;;  %v837_v30 = vld [vmem:[%s2130_s29 + $0x18] sm:$0xff]  ;;  %v2193_v41 = vld [vmem:[%s2136_s19] sm:$0x3f]  ;;  %v941_v54 = vld [vmem:[%s2141_s27 + $0x8] sm:$0xff]  ;;  %p1539_p1 = scmp.ne.s32.totalorder %s1940_s28, 1 }
  0x31   : > { %1692 = vmatprep.subr.bf16.mxu1 %v1958_v6  ;;  %v1699_v31 = vpack.c.bf16 %v837_v30, %v836_v28  ;;  %v840_v40 = vsub.s32 0, %v2189_v39  ;;  %v940_v53 = vld [vmem:[%s2141_s27] sm:$0xff]  ;;  %v942_v56 = vld [vmem:[%s2141_s27 + $0x10] sm:$0xff]  ;;  %v943_v57 = vld [vmem:[%s2141_s27 + $0x18] sm:$0xff]  ;;  %v932_v8 = vsub.s32 1, %v2189_v39  ;;  %v1127_v38 = vsub.s32 4, %v2189_v39 }
  0x32   : > { %v581_v11 = vld [vmem:[#allocation2] sm:$0xff]  ;;  %1697 = vmatpush3.bf16.msra.mxu0 %v1696_v29  ;;  %v1702_v55 = vpack.c.bf16 %v941_v54, %v940_v53  ;;  %v1705_v58 = vpack.c.bf16 %v943_v57, %v942_v56  ;;  %v1026_v60 = vld [vmem:[%s2151_s20 + $0x8] sm:$0xff]  ;;  %v1027_v61 = vld [vmem:[%s2151_s20 + $0x10] sm:$0xff]  ;;  %s1964_s18 = smov (!%p1539_p1), 96   ;;  %s1966_s21 = smov (!%p1539_p1), 64   ;;  %vm1169_vm5 = vcmask (!%p1539_p1), 785408  }
  0x33   : > { %1698 = vmatprep.subr.bf16.mxu0 %v1958_v6  ;;  %v841_v42 = vrot.slane %v2193_v41, %v840_v40  ;;  %v1025_v59 = vld [vmem:[%s2151_s20] sm:$0xff]  ;;  %v1028_v63 = vld [vmem:[%s2151_s20 + $0x18] sm:$0xff]  ;;  %v1030_v2 = vld [vmem:[%s2151_s20 + $0x28] sm:$0xff]  ;;  %v1132_v40 = vsub.s32 5, %v2189_v39  ;;  %vm1967_vm6 = vmmov (!%p1539_p1), 0   ;;  %s2470_s0 = sld [smem:[#allocation20_spill]] (!%p1539_p1) }
  0x34   : > { %1694 = vmatpush3.bf16.msra.mxu1 %v1693_v10  ;;  %v1708_v62 = vpack.c.bf16 %v1026_v60, %v1025_v59  ;;  %v1711_v0 = vpack.c.bf16 %v1028_v63, %v1027_v61  ;;  %v1029_v1 = vld [vmem:[%s2151_s20 + $0x20] sm:$0xff]  ;;  %v933_v10 = vrot.slane %v2193_v41, %v932_v8  ;;  %v1191_v53 = vld [vmem:[%s2429_s9 + $0x88] sm:$0xff] (!%p1539_p1)  ;;  %v1193_v59 = vld [vmem:[%s2429_s9 + $0x98] sm:$0xff] (!%p1539_p1)  ;;  %vm1355_vm7 = vcmask (!%p1539_p1), 24576  }
  0x35   : > { %1627 = vmatprep.subr.mxu1 %v1960_v9  ;;  %v1714_v3 = vpack.c.bf16 %v1030_v2, %v1029_v1  ;;  %v1174_v54 = vld [vmem:[%s2429_s9] sm:$0xff] (!%p1539_p1)  ;;  %v1175_v57 = vld [vmem:[%s2429_s9 + $0x8] sm:$0xff] (!%p1539_p1)  ;;  %v1176_v63 = vld [vmem:[%s2429_s9 + $0x10] sm:$0xff] (!%p1539_p1) }
  0x36   : > { %1700 = vmatpush3.bf16.msra.mxu0 %v1699_v31  ;;  %v1721_v61 = vpack.c.bf16 (!%p1539_p1), %v1175_v57, %v1174_v54  ;;  %v1194_v1 = vld [vmem:[%s2429_s9 + $0xa0] sm:$0xff] (!%p1539_p1)  ;;  %v1179_v8 = vld [vmem:[%s2429_s9 + $0x28] sm:$0xff] (!%p1539_p1) }
  0x37   : > { %1625 = vmatmul.mubr.msk.f32.vlgmr.msra.gmra.mrb[0].mxu1 %vm594_vm2, %v581_v11  ;;  %1707 = vmatprep.subr.bf16.mxu0 %v1958_v6 }
  0x38   : > { %1629 = vmatprep.mubr.msk.f32.mxu1 %vm1959_vm1, %v1960_v9 }
 0x10a   : > { %v664_v13 = vpop.f32.mrb[0].mxu1 }
 0x10b   : > { %v665_v14 = vadd.f32 %v1530_v12, %v664_v13  ;;  %v1626_v15 = vpop.f32.mrb[1].mxu1 }
 0x10d   : > { %669 = vrot.lane.b32.xlu0 %v665_v14, %s1961_s14  ;;  %s2471_s14 = sld [smem:[#allocation21_spill]] (!%p1539_p1) }
 0x17f   : > { %v670_v16 = vpop.permute.xlu0 %669 }
 0x180   : > { %1628 = vmatpush3.xpose.msk.msra.mxu1 %vm594_vm2, %v670_v16  ;;  %v1032_v16 = vld [vmem:[%s2151_s20 + $0x38] sm:$0xff] }
 0x181   : > { %1632 = vmatprep.subr.mxu1 %v1960_v9 }
 0x183   : > { %1630 = vmatmul.mubr.msk.f32.vlgmr.msra.gmra.mrb[2].mxu1 %vm594_vm2, %v665_v14 }
 0x184   : > { %1634 = vmatprep.mubr.msk.f32.mxu1 %vm1959_vm1, %v1960_v9 }
 0x256   : > { %v741_v17 = vpop.f32.mrb[2].mxu1 }
 0x257   : > { %v745_v18 = vmul.f32 0.17677669, %v741_v17  ;;  %v1631_v19 = vpop.f32.mrb[3].mxu1 }
 0x259   : > { %v747_v20 = vsel %vm746_vm3, %v745_v18, -inf }
 0x25a   : > { %748 = vmax.xlane.f32.xlu0 %v747_v20 }
 0x2e7   : > { %v749_v21 = vpop.xlane.xlu0 %748 }
 0x2e8   : > { %v750_v22 = vsub.f32 %v745_v18, %v749_v21  ;;  %v1536_v18 = vld [vmem:[%s566_s25] ss:$0 sm:$0xff] }
 0x2ea   : > { %v751_v23 = vmul.f32 1.442695, %v750_v22 }
 0x2ec   : > { %1839 = vpow2.f32 %v751_v23  ;;  %v1035_v23 = vsub.s32 3, %v2189_v39 }
 0x2f6   : > { %v1840_v24 = vpop.eup %1839 }
 0x2f7   : > { %v753_v25 = vsel %vm746_vm3, %v1840_v24, 0.0 }
 0x2f8   : > { %754 = vadd.xlane.f32.xlu1 %v753_v25 }
 0x309   : > { %758 = vrot.lane.b32.xlu1 %v665_v14, %s1962_s15  ;;  %s1963_s15 = smov (!%p1539_p1), 32  }
 0x385   : > { %v755_v32 = vpop.xlane.xlu1 %754 }
 0x386   : > { %1841 = vrcp.f32 %v755_v32 }
 0x389   : > { %v759_v33 = vpop.permute.xlu1 %758 }
 0x38a   : > { %1633 = vmatpush3.msra.mxu1 %v759_v33 }
 0x38b   : > { %1701 = vmatprep.subr.bf16.mxu1 %v1958_v6 }
 0x390   : > { %v1842_v34 = vpop.eup %1841 }
 0x391   : > { %v757_v35 = vmul.f32 %v1842_v34, %v1840_v24  ;;  %v1036_v24 = vrot.slane %v2193_v41, %v1035_v23  ;;  %v1183_v23 = vld [vmem:[%s2429_s9 + $0x48] sm:$0xff] (!%p1539_p1) }
 0x393   : > { %1635 = vmatmul.mubr.msk.f32.vlgmr.msra.gmra.mrb[4].mxu1 %vm746_vm3, %v757_v35 }
 0x394   : > { %1656 = vmatprep.mubr.msk.f32.mxu1 %vm1959_vm1, %v1960_v9  ;;  %1703 = vmatpush3.bf16.msra.mxu1 %v1702_v55 }
 0x395   : > { %1704 = vmatprep.subr.bf16.mxu1 %v1958_v6 }
 0x398   : > { %1706 = vmatpush3.bf16.msra.mxu1 %v1705_v58  ;;  %v1192_v58 = vld [vmem:[%s2429_s9 + $0x90] sm:$0xff] (!%p1539_p1) }
 0x466   : > { %v830_v36 = vpop.f32.mrb[4].mxu1 }
 0x467   : > { %v1636_v37 = vpop.f32.mrb[5].mxu1  ;;  %1646 = vmatmul.mubr.msk.f32.vlgmr.msra.gmra.mrb[0].mxu0 %vm594_vm2, %v830_v36 }
 0x468   : > { %1675 = vmatprep.mubr.msk.f32.mxu0 %vm1959_vm1, %v1960_v9  ;;  %1709 = vmatpush3.bf16.msra.mxu0 %v1708_v62  ;;  %v937_v9 = vsub.s32 2, %v2189_v39  ;;  %v1723_v62 = vpack.c.bf16 (!%p1539_p1), %v1193_v59, %v1192_v58 }
 0x469   : > { %1710 = vmatprep.subr.bf16.mxu0 %v1958_v6 }
 0x46a   : > { %v938_v13 = vrot.slane %v2193_v41, %v937_v9  ;;  %v1965_v9 = vmov (!%p1539_p1), 0.0|0.0  }
 0x46b   : > { %1751 = vmatprep.subr.bf16.mxu1 (!%p1539_p1), %v1965_v9 }
 0x46c   : > { %1712 = vmatpush3.bf16.msra.mxu0 %v1711_v0  ;;  %v1177_v0 = vld [vmem:[%s2429_s9 + $0x18] sm:$0xff] (!%p1539_p1) }
 0x46d   : > { %1713 = vmatprep.subr.bf16.mxu0 %v1958_v6 }
 0x470   : > { %1715 = vmatpush3.bf16.msra.mxu0 %v1714_v3  ;;  %v1195_v3 = vld [vmem:[%s2429_s9 + $0xa8] sm:$0xff] (!%p1539_p1) }
 0x471   : > { %1716 = vmatprep.subr.bf16.mxu0 %v1958_v6  ;;  %v1031_v6 = vld [vmem:[%s2151_s20 + $0x30] sm:$0xff] }
 0x472   : > { %v1717_v17 = vpack.c.bf16 %v1032_v16, %v1031_v6  ;;  %v1198_v6 = vld [vmem:[%s2429_s9 + $0xc0] sm:$0xff] (!%p1539_p1)  ;;  %v1199_v16 = vld [vmem:[%s2429_s9 + $0xc8] sm:$0xff] (!%p1539_p1) }
 0x474   : > { %1718 = vmatpush3.bf16.msra.mxu0 %v1717_v17  ;;  %v1277_v17 = vld [vmem:[%s2431_s11] sm:$0xff] (!%p1539_p1) }
 0x53a   : > { %v911_v43 = vpop.f32.mrb[0].mxu0 }
 0x53b   : > { %v912_v44 = vadd.f32 %v911_v43, %v841_v42  ;;  %v1647_v45 = vpop.f32.mrb[1].mxu0  ;;  %v1128_v42 = vrot.slane %v2193_v41, %v1127_v38 }
 0x53d   : > { %v915_v46 = vadd.f32 %v912_v44, %v581_v11  ;;  %v1133_v44 = vrot.slane %v2193_v41, %v1132_v40 }
 0x53f   : > { %v916_v47 = vsel %vm594_vm2, %v915_v46, 0.0 }
 0x540   : > { %917 = vadd.xlane.f32.xlu1 %v916_v47 }
 0x5cd   : > { %v918_v48 = vpop.xlane.xlu1 %917 }
 0x5ce   : > { %v920_v49 = vmul.f32 0.03125, %v918_v48 }
 0x5d0   : > { %v921_v50 = vsub.f32 %v915_v46, %v920_v49 }
 0x5d2   : > { %v922_v51 = vmul.f32 %v921_v50, %v921_v50 }
 0x5d4   : > { %v923_v52 = vsel %vm594_vm2, %v922_v51, 0.0 }
 0x5d5   : > { %924 = vadd.xlane.f32.xlu0 %v923_v52  ;;  %v1190_v52 = vld [vmem:[%s2429_s9 + $0x80] sm:$0xff] (!%p1539_p1) }
 0x5d6   : > { %v1719_v56 = vpack.c.bf16 (!%p1539_p1), %v1191_v53, %v1190_v52 }
 0x5d8   : > { %1720 = vmatprep.subr.bf16.mxu0 (!%p1539_p1), %v1719_v56 }
 0x662   : > { %v925_v4 = vpop.xlane.xlu0 %924 }
 0x663   : > { %v926_v5 = vmul.f32 0.03125, %v925_v4  ;;  %v1725_v4 = vpack.c.bf16 (!%p1539_p1), %v1177_v0, %v1176_v63  ;;  %v1206_v0 = vld [vmem:[%s2470_s0] sm:$0x1] (!%p1539_p1) }
 0x665   : > { %v927_v7 = vadd.f32 1e-05, %v926_v5  ;;  %v1727_v5 = vpack.c.bf16 (!%p1539_p1), %v1195_v3, %v1194_v1 }
 0x667   : > { %1843 = vrsqrt.f32 %v927_v7  ;;  %v1178_v7 = vld [vmem:[%s2429_s9 + $0x20] sm:$0xff] (!%p1539_p1) }
 0x671   : > { %v1844_v11 = vpop.eup %1843 }
 0x672   : > { %v929_v12 = vmul.f32 %v1844_v11, %v921_v50  ;;  %v1197_v11 = vld [vmem:[%s2429_s9 + $0xb8] sm:$0xff] (!%p1539_p1) }
 0x674   : > { %v934_v14 = vmul.f32 %v933_v10, %v929_v12  ;;  %v1196_v10 = vld [vmem:[%s2429_s9 + $0xb0] sm:$0xff] (!%p1539_p1)  ;;  %v1729_v12 = vpack.c.bf16 (!%p1539_p1), %v1179_v8, %v1178_v7 }
 0x676   : > { %v939_v15 = vadd.f32 %v938_v13, %v934_v14  ;;  %v1731_v13 = vpack.c.bf16 (!%p1539_p1), %v1197_v11, %v1196_v10  ;;  %v1180_v14 = vld [vmem:[%s2429_s9 + $0x30] sm:$0xff] (!%p1539_p1) }
 0x678   : > { %1657 = vmatmul.mubr.msk.f32.vlgmr.msra.gmra.mrb[6].mxu1 %vm594_vm2, %v939_v15 }
 0x74b   : > { %v1020_v19 = vpop.f32.mrb[6].mxu1 }
 0x74c   : > { %v1021_v20 = vadd.f32 %v1536_v18, %v1020_v19  ;;  %v1658_v21 = vpop.f32.mrb[7].mxu1  ;;  %v1278_v18 = vld [vmem:[%s2431_s11 + $0x8] sm:$0xff] (!%p1539_p1) }
 0x74d   : > { %v1735_v21 = vpack.c.bf16 (!%p1539_p1), %v1199_v16, %v1198_v6 }
 0x74e   : > { %v1024_v22 = vmax.f32 %v1021_v20, 0.0  ;;  %v1752_v20 = vpack.c.bf16 (!%p1539_p1), %v1278_v18, %v1277_v17 }
 0x750   : > { %1676 = vmatmul.mubr.msk.f32.vlgmr.msra.gmra.mrb[2].mxu0 %vm1037_vm4, %v1024_v22  ;;  %v1182_v22 = vld [vmem:[%s2429_s9 + $0x40] sm:$0xff] (!%p1539_p1)  ;;  %1753 = vmatpush3.bf16.msra.mxu1 (!%p1539_p1), %v1752_v20 }
 0x751   : > { %1722 = vmatpush3.bf16.msra.mxu0 (!%p1539_p1), %v1721_v61  ;;  %1754 = vmatprep.subr.bf16.mxu1 (!%p1539_p1), %v1965_v9  ;;  %v1280_v61 = vld [vmem:[%s2431_s11 + $0x18] sm:$0xff] (!%p1539_p1) }
 0x752   : > { %1724 = vmatprep.subr.bf16.mxu0 (!%p1539_p1), %v1723_v62 }
 0x755   : > { %1726 = vmatpush3.bf16.msra.mxu0 (!%p1539_p1), %v1725_v4  ;;  %v1281_v4 = vld [vmem:[%s2471_s14] sm:$0x1] (!%p1539_p1) }
 0x756   : > { %1728 = vmatprep.subr.bf16.mxu0 (!%p1539_p1), %v1727_v5 }
 0x759   : > { %1730 = vmatpush3.bf16.msra.mxu0 (!%p1539_p1), %v1729_v12 }
 0x75a   : > { %1732 = vmatprep.subr.bf16.mxu0 (!%p1539_p1), %v1731_v13 }
 0x823   : > { %v1107_v25 = vpop.f32.mrb[2].mxu0 }
 0x824   : > { %v1108_v26 = vadd.f32 %v1107_v25, %v1036_v24  ;;  %v1677_v27 = vpop.f32.mrb[3].mxu0  ;;  %v1200_v24 = vld [vmem:[%s2429_s9 + $0xd0] sm:$0xff] (!%p1539_p1)  ;;  %v1201_v25 = vld [vmem:[%s2429_s9 + $0xd8] sm:$0xff] (!%p1539_p1) }
 0x825   : > { %v1739_v27 = vpack.c.bf16 (!%p1539_p1), %v1201_v25, %v1200_v24 }
 0x826   : > { %v1111_v28 = vadd.f32 %v1108_v26, %v939_v15  ;;  %v1181_v15 = vld [vmem:[%s2429_s9 + $0x38] sm:$0xff] (!%p1539_p1)  ;;  %v1737_v26 = vpack.c.bf16 (!%p1539_p1), %v1183_v23, %v1182_v22 }
 0x827   : > { %v1733_v19 = vpack.c.bf16 (!%p1539_p1), %v1181_v15, %v1180_v14 }
 0x828   : > { %v1112_v29 = vsel %vm594_vm2, %v1111_v28, 0.0 }
 0x829   : > { %1113 = vadd.xlane.f32.xlu0 %v1112_v29  ;;  %1734 = vmatpush3.bf16.msra.mxu0 (!%p1539_p1), %v1733_v19  ;;  %v1185_v29 = vld [vmem:[%s2429_s9 + $0x58] sm:$0xff] (!%p1539_p1) }
 0x82a   : > { %1736 = vmatprep.subr.bf16.mxu0 (!%p1539_p1), %v1735_v21 }
 0x82d   : > { %1738 = vmatpush3.bf16.msra.mxu0 (!%p1539_p1), %v1737_v26 }
 0x82e   : > { %1740 = vmatprep.subr.bf16.mxu0 (!%p1539_p1), %v1739_v27 }
 0x8b6   : > { %v1114_v30 = vpop.xlane.xlu0 %1113 }
 0x8b7   : > { %v1115_v31 = vmul.f32 0.03125, %v1114_v30  ;;  %v1202_v30 = vld [vmem:[%s2429_s9 + $0xe0] sm:$0xff] (!%p1539_p1) }
 0x8b9   : > { %v1116_v32 = vsub.f32 %v1111_v28, %v1115_v31  ;;  %v1184_v28 = vld [vmem:[%s2429_s9 + $0x50] sm:$0xff] (!%p1539_p1)  ;;  %v1203_v31 = vld [vmem:[%s2429_s9 + $0xe8] sm:$0xff] (!%p1539_p1) }
 0x8bb   : > { %v1117_v33 = vmul.f32 %v1116_v32, %v1116_v32 }
 0x8bd   : > { %v1118_v34 = vsel %vm594_vm2, %v1117_v33, 0.0  ;;  %v1743_v33 = vpack.c.bf16 (!%p1539_p1), %v1203_v31, %v1202_v30 }
 0x8be   : > { %1119 = vadd.xlane.f32.xlu0 %v1118_v34  ;;  %v1186_v34 = vld [vmem:[%s2429_s9 + $0x60] sm:$0xff] (!%p1539_p1) }
 0x94b   : > { %v1120_v35 = vpop.xlane.xlu0 %1119 }
 0x94c   : > { %v1121_v36 = vmul.f32 0.03125, %v1120_v35  ;;  %v1187_v35 = vld [vmem:[%s2429_s9 + $0x68] sm:$0xff] (!%p1539_p1) }
 0x94d   : > { %v1745_v38 = vpack.c.bf16 (!%p1539_p1), %v1187_v35, %v1186_v34 }
 0x94e   : > { %v1122_v37 = vadd.f32 1e-05, %v1121_v36  ;;  %v1204_v36 = vld [vmem:[%s2429_s9 + $0xf0] sm:$0xff] (!%p1539_p1) }
 0x950   : > { %1845 = vrsqrt.f32 %v1122_v37  ;;  %v1205_v37 = vld [vmem:[%s2429_s9 + $0xf8] sm:$0xff] (!%p1539_p1) }
 0x951   : > { %v1747_v40 = vpack.c.bf16 (!%p1539_p1), %v1205_v37, %v1204_v36 }
 0x95a   : > { %v1846_v43 = vpop.eup %1845 }
 0x95b   : > { %v1124_v45 = vmul.f32 %v1846_v43, %v1116_v32  ;;  %1139 = sbr.rel (%p1539_p1) target bundleno = 2961 (0xb91), region = 80  ;;  %v1741_v32 = vpack.c.bf16 (!%p1539_p1), %v1185_v29, %v1184_v28  ;;  %v1189_v43 = vld [vmem:[%s2429_s9 + $0x78] sm:$0xff] (!%p1539_p1) }
 0x95d   : > { %v1129_v46 = vmul.f32 %v1128_v42, %v1124_v45  ;;  %1742 = vmatpush3.bf16.msra.mxu0 (!%p1539_p1), %v1741_v32  ;;  %v1188_v42 = vld [vmem:[%s2429_s9 + $0x70] sm:$0xff] (!%p1539_p1) }
 0x95e   : > { %1744 = vmatprep.subr.bf16.mxu0 (!%p1539_p1), %v1743_v33 }
 0x95f   : > { %v2233_v47 = vadd.f32 %v1133_v44, %v1129_v46  ;;  %v1749_v44 = vpack.c.bf16 (!%p1539_p1), %v1189_v43, %v1188_v42 }
 0x961   : > { %1135 = vst.msk [vmem:[#allocation2] sm:$0xff] %vm594_vm2, %v2233_v47  ;;  %v1141_v48 = vrot.slane (!%p1539_p1), %v2233_v47, 1  ;;  %v1155_v49 = vrot.slane (!%p1539_p1), %v2233_v47, 5  ;;  %v1145_v39 = vrot.slane (!%p1539_p1), %v2233_v47, 2  ;;  %v1159_v50 = vrot.slane (!%p1539_p1), %v2233_v47, 6  ;;  %1746 = vmatpush3.bf16.msra.mxu0 (!%p1539_p1), %v1745_v38 }
 0x962   : > { %v1149_v41 = vrot.slane %v2233_v47, 3  ;;  %v1163_v51 = vrot.slane %v2233_v47, 7  ;;  %1748 = vmatprep.subr.bf16.mxu0 %v1747_v40 }
 0x963   : > { %v1847_v55 = vpack.i.bf16 %v1141_v48, %v1155_v49  ;;  %v1852_v2 = vpack.i.bf16 %v1145_v39, %v1159_v50  ;;  %v1153_v39 = vrot.slane %v2233_v47, 4 }
 0x964   : > { %v1857_v60 = vpack.i.bf16 %v1149_v41, %v1163_v51 }
 0x965   : > { %1848 = vrot.lane.b32.xlu0 %v1847_v55, %s1963_s15  ;;  %1750 = vmatpush3.bf16.msra.mxu0 %v1749_v44 }
 0x966   : > { %1858 = vrot.lane.b32.xlu1 %v1857_v60, %s1964_s18  ;;  %v1279_v60 = vld [vmem:[%s2431_s11 + $0x10] sm:$0xff] }
 0x967   : > { %v1755_v62 = vpack.c.bf16 %v1280_v61, %v1279_v60 }
 0x969   : > { %1853 = vrot.lane.b32.xlu0 %v1852_v2, %s1966_s21  ;;  %1756 = vmatpush3.bf16.msra.mxu1 %v1755_v62 }
 0x9d7   : > { %v1849_v45 = vpop.permute.xlu0 %1848 }
 0x9d8   : > { %v1859_v46 = vpop.permute.xlu1 %1858  ;;  %v1851_v48 = vunpack.i.h.bf16 %v1849_v45  ;;  %v1850_v49 = vunpack.i.l.bf16 %v1849_v45 }
 0x9d9   : > { %v1861_v41 = vunpack.i.h.bf16 %v1859_v46  ;;  %v1860_v51 = vunpack.i.l.bf16 %v1859_v46 }
 0x9da   : > { %v1167_v54 = vsel %vm594_vm2, %v2233_v47, %v1851_v48  ;;  %v1171_v55 = vsel %vm594_vm2, %v1153_v39, %v1850_v49  ;;  %v1968_v47 = vmov 0.0  }
 0x9db   : > { %v1854_v50 = vpop.permute.xlu0 %1853  ;;  %1686 = vmatprep.mubr.msk.f32.mxu1 %vm1967_vm6, %v1968_v47 }
 0x9dc   : > { %v1856_v52 = vunpack.i.h.bf16 %v1854_v50  ;;  %v1855_v53 = vunpack.i.l.bf16 %v1854_v50 }
 0x9de   : > { %v1168_v56 = vsel %vm1037_vm4, %v1167_v54, %v1856_v52  ;;  %v1172_v57 = vsel %vm1037_vm4, %v1171_v55, %v1855_v53 }
 0x9df   : > { %v1173_v58 = vsel %vm1169_vm5, %v1172_v57, %v1860_v51  ;;  %v1170_v59 = vsel %vm1169_vm5, %v1168_v56, %v1861_v41 }
 0x9e0   : > { %1271 = vmatprep.mubr.f32.mxu0 %v1173_v58 }
 0x9e1   : > { %1272 = vmatmul.mubr.f32.vlgmr.msra.gmra.mrb[0].mxu0 %v1170_v59 }
 0xab4   : > { %v1608_v63 = vpop.f32.mrb[0].mxu0 }
 0xab5   : > { %v1609_v1 = vpop.f32.mrb[1].mxu0 }
 0xab6   : > { %v1610_v2 = vadd.f32 %v1609_v1, %v1608_v63 }
 0xab8   : > { %v1274_v3 = vadd.f32 %v1610_v2, %v1206_v0 }
 0xaba   : > { %1687 = vmatmul.mubr.msk.f32.vlgmr.msra.gmra.mrb[0].mxu1 %vm594_vm2, %v1274_v3 }
 0xb8d   : > { %v1351_v5 = vpop.f32.mrb[0].mxu1 }
 0xb8e   : > { %v1352_v7 = vadd.f32 %v1351_v5, %v1281_v4  ;;  %v1688_v8 = vpop.f32.mrb[1].mxu1 }
 0xb90   : > { %1356 = vst.msk [vmem:[%s2155_s4] sm:$0x1] %vm1355_vm7, %v1352_v7 }
 0xb91 PF: > { %s2472_s15 = sld [smem:[#allocation8_spill]]  ;;  %s1370_s28 = sshll.u32 %s2155_s4, 4  ;;  %s1371_s28 = int_to_ptr.vmem [resolvable:$true] %s1370_s28 }
 0xb92   : > { %s2474_s19 = sld [smem:[#allocation22_spill]]  ;;  %s2475_s23 = sand.u32 1, %s1932_s26  }
 0xb93   : > { %s1358_s27 = scalar_lea.sflag [#allocation4], %s2475_s23  ;;  %s1862_s24 = scalar_lea.vmem %s1371_s28, 16 }
 0xb94   : > { %p1863_p2 = scmp.ne.s32.totalorder %s1371_s28, %s1862_s24  ;;  %s1969_s25 = smov [#allocation3]  }
 0xb95   : > { %s1866_s21 = sshll.u32 %s1969_s25, 4  ;;  %s1867_s21 = int_to_ptr.vmem [resolvable:$false] %s1866_s21 }
 0xb96   : > { %p1864_p4 = pnand %p1863_p2, %p2089_p3  ;;  %s1868_s13 = scalar_lea.vmem %s1867_s21, 32 }
 0xb97   : > { %s1541_s16 = sshll.u32 %s2472_s15, 4  ;;  %p1869_p6 = scmp.lt.s32.totalorder %s1371_s28, %s1867_s21 }
 0xb98   : > { %s2370_s22 = scalar_lea.hbm %s2474_s19, %s1541_s16  ;;  %p1865_p5 = pneg %p1864_p4 }
 0xb99   : > { %p1870_p7 = scmp.lt.s32.totalorder %s1868_s13, %s1862_s24 }
 0xb9b   : > { %p1871_p8 = por %p1870_p7, %p1869_p6 }
 0xb9d   : > { %p1872_p10 = pnand %p1871_p8, %p1865_p5 }
 0xb9f   : > { %1875 = shalt.err (!%p1872_p10)
}
 0xba0   : > { %s1876_s4 = scalar_lea.hbm %s2370_s22, 16  ;;  %s1880_s12 = scalar_lea.hbm %s2474_s19, 32 }
 0xba1   : > { %p1877_p11 = scmp.ne.s32.totalorder %s2370_s22, %s1876_s4  ;;  %p1881_p0 = scmp.lt.u32.totalorder %s2370_s22, %s2474_s19 }
 0xba2   : > { %p1882_p1 = scmp.lt.u32.totalorder %s1880_s12, %s1876_s4  ;;  %p1884_p4 = scmp.lt.u32.totalorder %s1876_s4, %s2370_s22 }
 0xba3   : > { %p1878_p12 = pnand %p1877_p11, %p2089_p3 }
 0xba4   : > { %p1883_p2 = por %p1882_p1, %p1881_p0 }
 0xba5   : > { %p1879_p13 = pneg %p1878_p12 }
 0xba6   : > { %p1885_p5 = por %p1884_p4, %p1883_p2 }
 0xba8   : > { %p1886_p6 = pnand %p1885_p5, %p1879_p13 }
 0xbaa   : > { %1889 = shalt.err (!%p1886_p6)
}
 0xbab   : > { %1757 = dma.vmem_to_hbm [thread:$0]  (%p2089_p3), %s1371_s28, 16, %s2370_s22, %s1358_s27  }
 0xbac PF: > { %s2476_s30 = sld [smem:[#allocation11_spill]]  ;;  %s2477_s14 = sld [smem:[#allocation6_spill]] }
 0xbb2   : > { %p1763_p7 = scmp.ge.s32.totalorder %s2476_s30, 2  ;;  %s1382_s16 = sand.u32 1, %s2477_s14  }
 0xbb3   : > { %s1383_s18 = scalar_lea.sflag [#allocation4], %s1382_s16 }
 0xbb4   : > { %p1760_p8 = pnand %p1763_p7, %p2099_p9 }
 0xbb6   : > { %1923 = dma.done.wait (!%p1760_p8), %s1383_s18, 16  }
 0xbb7   : > { %1925 = vsyncadd (!%p1760_p8), %s1383_s18, 4294967280  ;;  %s26_s15 = sadd.s32 1, %s2476_s30   ;;  %s2479_s17 = sld [smem:[#allocation7_spill]] }
 0xbb8   : > { %p23_p10 = scmp.ge.s32.totalorder %s26_s15, 6   ;;  %s2480_s27 = sld [smem:[#allocation16_spill]] }
 0xbb9   : > { %s2481_s28 = sld [smem:[#allocation9_spill]]  ;;  %s2482_s29 = sld [smem:[#allocation10_spill]] }
 0xbba   : > { %s2483_s30 = sld [smem:[#allocation12_spill]]  ;;  %s2484_s14 = sld [smem:[#allocation14_spill]] }
 0xbbb   : > { %s2485_s25 = smov %s1932_s26  ;;  %25 = sbr.rel (!%p23_p10) target bundleno = 12 (0xc), region = 136 }
 0xbbd   : > { %s2486_s26 = smov %s2479_s17 }
 0xbc2   :  { %1387 = vsyncpa [#allocation4], 1 }
 0xbc3   :  { %1389 = vsyncpa [#allocation4 + $0x1], 1 }

</bundles_post_ra>
